<compile_context>
chip_gen: v7x
topology: tpu7x:2x2x1
jax: 0.10.0
libtpu: 0.0.40
codegen_flags: <defaults>
</compile_context>

<pallas_src>
import functools

import jax
import jax.numpy as jnp
from jax.experimental import pallas as pl
from jax.experimental.pallas import tpu as pltpu


def _round_up(n, m):
    return (n + m - 1) // m * m


def _vmem_capacity_bytes():
    """Physical VMEM capacity; conservative 64 MiB fallback (v7x per-TC)."""
    try:
        info = pltpu.get_tpu_info()
        cap = getattr(info, "vmem_capacity_bytes", None)
        if cap:
            return int(cap)
    except Exception:
        pass
    return 64 * 1024 * 1024


def _pick_tiles(d_model, d_inner, tm_req, tk_req, mm_itemsize, x_itemsize,
                out_itemsize, acc_in_out, vmem_budget):
    """Pick (tk, tm_cap): largest lane-aligned tk that still allows tm >= ~384."""
    tk_hi = max(128, min(_round_up(d_inner, 128), (max(tk_req, 128) // 128) * 128))
    cands = sorted({c for c in (tk_hi, 512, 384, 256, 128) if 128 <= c <= tk_hi},
                   reverse=True)

    def tm_for(tk):
        # double-buffered packed [Wz|Wg] (2*tk wide) + W_out tiles
        weight_bytes = 2 * 3 * d_model * tk * mm_itemsize
        per_row = (d_model * (2 * x_itemsize + 2 * out_itemsize + mm_itemsize
                              + (0 if acc_in_out else 4))
                   + 28 * tk)                      # f32 z/gate/inner temporaries
        return max(8, (vmem_budget - weight_bytes) // per_row)

    want = min(max(tm_req, 8), 384)                # roofline-ish floor for tm
    tk_eff, tm_cap = cands[-1], tm_for(cands[-1])
    for c in cands:
        cap = tm_for(c)
        if cap >= want:
            tk_eff, tm_cap = c, cap
            break
    return tk_eff, tm_cap


def _mamba_kernel(x_ref, gamma_ref, beta_ref, wzg_ref, dtw_ref, wo_ref, o_ref,
                  xn_scr, *acc_opt, eps, mm_dtype, tk, acc_in_out, inv_d):
    """Grid: (row_tiles, d_inner_tiles). Row axis parallel, k axis reduction."""
    acc_ref = o_ref if acc_in_out else acc_opt[0]
    k = pl.program_id(1)

    @pl.when(k == 0)
    def _():
        # One-pass LayerNorm stats in f32; cache the normalized, MXU-dtype
        # activations in VMEM scratch for the whole k loop.
        x = x_ref[...].astype(jnp.float32)
        mean = jnp.sum(x, axis=-1, keepdims=True) * inv_d
        var = jnp.sum(x * x, axis=-1, keepdims=True) * inv_d - mean * mean
        xn = (x - mean) * jax.lax.rsqrt(var + eps)
        xn = (xn * gamma_ref[...].astype(jnp.float32)
              + beta_ref[...].astype(jnp.float32))
        xn_scr[...] = xn.astype(mm_dtype)
        # Residual folded into the accumulator init.
        acc_ref[...] = x.astype(acc_ref.dtype)

    # Fused z/gate projection: one MXU matmul against the packed [Wz|Wg]
    # tile, then lane-aligned split (tk is a multiple of 128 -> free).
    zg = jnp.dot(xn_scr[...], wzg_ref[...], preferred_element_type=jnp.float32)
    z, gate = zg[:, :tk], zg[:, tk:]

    # Gating math stays f32 on the VPU/EUP; softmax(-dt) applied in f32 to
    # the activations (not folded into bf16 W_out).
    z_gated = z * jax.nn.sigmoid(jnp.clip(z, -15.0, 15.0))
    gate_safe = jnp.clip(gate, -15.0, 15.0)
    inner = (z_gated * dtw_ref[...]) * (gate_safe * jax.nn.sigmoid(gate_safe))

    acc_ref[...] += jnp.dot(inner.astype(mm_dtype), wo_ref[...],
                            preferred_element_type=jnp.float32).astype(acc_ref.dtype)

    if not acc_in_out:
        @pl.when(k == pl.num_programs(1) - 1)
        def _():
            o_ref[...] = acc_ref[...].astype(o_ref.dtype)


def svd_mamba_forward(x, params, *, tm=1024, tk=512, matmul_dtype=jnp.bfloat16):
    """x: [B, S, d_model].  params: dict of weights (see init_params)."""
    B, S, d_model = x.shape
    d_inner = params["w_out_t"].shape[0]
    N = B * S

    # ---- generation-aware VMEM budget & tile selection ----
    vmem_cap = _vmem_capacity_bytes()
    vmem_limit = int(vmem_cap * 0.85)          # ~108 MiB on 128 MiB parts, ~54 on v7x
    vmem_budget = int(vmem_limit * 0.90)       # headroom for compiler temporaries

    acc_in_out = (x.dtype == jnp.float32)      # accumulate directly into o_ref
    mm_itemsize = jnp.dtype(matmul_dtype).itemsize
    x_itemsize = jnp.dtype(x.dtype).itemsize

    tk_eff, tm_cap = _pick_tiles(d_model, d_inner, tm, tk, mm_itemsize,
                                 x_itemsize, x_itemsize, acc_in_out, vmem_budget)

    # Row tiling: biggest tile that fits VMEM, but keep >= 2 row tiles so the
    # "parallel" axis can be sharded across 2 TensorCores on megacore parts.
    row_cap = max(8, _round_up((N + 1) // 2, 8))
    tm_eff = max(8, (min(tm, tm_cap, row_cap) // 8) * 8)
    n_pad = _round_up(N, tm_eff)

    # Reduction tiling: pad d_inner to a multiple of tk (padded weight cols /
    # rows are zero -> contribute exactly nothing).
    d_inner_p = _round_up(d_inner, tk_eff)
    n_k = d_inner_p // tk_eff

    # ---- host-side weight prep: contiguous per-k packed tiles ----
    dt_w = jax.nn.softmax(-params["dt"].astype(jnp.float32))          # [d_inner]
    w_z = params["w_in_t"][:, :d_inner].astype(jnp.float32)           # [d_model, d_inner]
    w_g = params["w_in_t"][:, d_inner:].astype(jnp.float32)
    w_o = params["w_out_t"].astype(jnp.float32)                       # [d_inner, d_model]
    if d_inner_p != d_inner:
        pad = d_inner_p - d_inner
        w_z = jnp.pad(w_z, ((0, 0), (0, pad)))
        w_g = jnp.pad(w_g, ((0, 0), (0, pad)))
        w_o = jnp.pad(w_o, ((0, pad), (0, 0)))
        dt_w = jnp.pad(dt_w, ((0, pad),))
    w_z = w_z.reshape(d_model, n_k, tk_eff)
    w_g = w_g.reshape(d_model, n_k, tk_eff)
    wzg = jnp.transpose(jnp.concatenate([w_z, w_g], axis=-1), (1, 0, 2))
    wzg = wzg.astype(matmul_dtype)                                     # [n_k, d_model, 2*tk]
    w_o = w_o.reshape(n_k, tk_eff, d_model).astype(matmul_dtype)       # [n_k, tk, d_model]
    dtw = dt_w.reshape(n_k, 1, tk_eff)                                 # [n_k, 1, tk] f32
    gamma = params["ln_gamma"].reshape(1, d_model).astype(jnp.float32)
    beta = params["ln_beta"].reshape(1, d_model).astype(jnp.float32)

    x_flat = x.reshape(N, d_model)
    if n_pad != N:
        x_flat = jnp.pad(x_flat, ((0, n_pad - N), (0, 0)))

    grid = (n_pad // tm_eff, n_k)
    n_row_tiles = grid[0]
    kernel = functools.partial(_mamba_kernel, eps=1e-5, mm_dtype=matmul_dtype,
                               tk=tk_eff, acc_in_out=acc_in_out,
                               inv_d=1.0 / d_model)

    cost = pl.CostEstimate(
        flops=int(6 * n_pad * d_model * d_inner_p),
        transcendentals=int(2 * n_pad * d_inner_p),
        bytes_accessed=int(2 * n_pad * d_model * x_itemsize
                           + n_row_tiles * 3 * d_model * d_inner_p * mm_itemsize),
    )

    scratch = [pltpu.VMEM((tm_eff, d_model), matmul_dtype)]      # cached normalized x
    if not acc_in_out:
        scratch.append(pltpu.VMEM((tm_eff, d_model), jnp.float32))  # f32 accumulator

    out_flat = pl.pallas_call(
        kernel,
        out_shape=jax.ShapeDtypeStruct((n_pad, d_model), x.dtype),
        grid_spec=pltpu.PrefetchScalarGridSpec(
            num_scalar_prefetch=0,
            grid=grid,
            in_specs=[
                pl.BlockSpec((tm_eff, d_model), lambda i, k: (i, 0)),            # x rows
                pl.BlockSpec((1, d_model), lambda i, k: (0, 0)),                 # ln gamma
                pl.BlockSpec((1, d_model), lambda i, k: (0, 0)),                 # ln beta
                pl.BlockSpec((None, d_model, 2 * tk_eff), lambda i, k: (k, 0, 0)),  # [Wz|Wg] tile
                pl.BlockSpec((None, 1, tk_eff), lambda i, k: (k, 0, 0)),         # softmax(-dt) tile
                pl.BlockSpec((None, tk_eff, d_model), lambda i, k: (k, 0, 0)),   # W_out tile
            ],
            out_specs=pl.BlockSpec((tm_eff, d_model), lambda i, k: (i, 0)),
            scratch_shapes=scratch,
        ),
        compiler_params=pltpu.CompilerParams(
            dimension_semantics=("parallel", "arbitrary"),
            vmem_limit_bytes=vmem_limit),
        cost_estimate=cost,
    )(x_flat, gamma, beta, wzg, dtw, w_o)

    return out_flat[:N].reshape(B, S, d_model)


def init_params(key, d_model, d_state=16, expand_factor=2,
                dt_min=1e-3, dt_max=0.1, dtype=jnp.float32):
    """Deterministic synthetic init matching the module's parameter shapes."""
    d_inner = int(d_model * expand_factor)
    k_in, k_out, k_dt, k_a, k_b, k_c = jax.random.split(key, 6)

    # nn.Linear weights are [out, in]; store pre-transposed [in, out].
    bound_in = 1.0 / (d_model ** 0.5)
    w_in = jax.random.uniform(k_in, (2 * d_inner, d_model), dtype,
                              minval=-bound_in, maxval=bound_in)
    bound_out = 1.0 / (d_inner ** 0.5)
    w_out = jax.random.uniform(k_out, (d_model, d_inner), dtype,
                               minval=-bound_out, maxval=bound_out)
    dt = jax.random.uniform(k_dt, (d_inner,), dtype) * (dt_max - dt_min) + dt_min

    return {
        "w_in_t": w_in.T,                       # [d_model, 2*d_inner]
        "w_out_t": w_out.T,                     # [d_inner, d_model]
        "dt": dt,                               # [d_inner]
        "ln_gamma": jnp.ones((d_model,), dtype),
        "ln_beta": jnp.zeros((d_model,), dtype),
        # A, B, C exist in the module but are unused in forward; kept for parity.
        "A": 0.1 * jax.random.normal(k_a, (d_inner, d_state), dtype),
        "B": 0.1 * jax.random.normal(k_b, (d_inner, d_state), dtype),
        "C": 0.1 * jax.random.normal(k_c, (d_inner, d_state), dtype),
    }


def _reference_forward(x, params):
    """Pure-JAX f32 reference: exact module semantics."""
    mean = jnp.mean(x, axis=-1, keepdims=True)
    var = jnp.mean((x - mean) ** 2, axis=-1, keepdims=True)
    xn = (x - mean) / jnp.sqrt(var + 1e-5)
    xn = xn * params["ln_gamma"] + params["ln_beta"]
    proj = xn @ params["w_in_t"]
    d_inner = proj.shape[-1] // 2
    z, gate = proj[..., :d_inner], proj[..., d_inner:]
    z_gated = z * jax.nn.sigmoid(jnp.clip(z, -15.0, 15.0))
    dt_w = jax.nn.softmax(-params["dt"])
    gate_safe = jnp.clip(gate, -15.0, 15.0)
    inner = (z_gated * dt_w) * (gate_safe * jax.nn.sigmoid(gate_safe))
    return inner @ params["w_out_t"] + x


def _reference_forward_matched(x, params, matmul_dtype):
    """Reference with the same bf16 operand rounding / f32 dt ordering as the kernel."""
    d_inner = params["w_out_t"].shape[0]
    xf = x.astype(jnp.float32)
    mean = jnp.mean(xf, axis=-1, keepdims=True)
    var = jnp.mean(xf * xf, axis=-1, keepdims=True) - mean * mean
    xn = (xf - mean) * jax.lax.rsqrt(var + 1e-5)
    xn = xn * params["ln_gamma"] + params["ln_beta"]
    w_z = params["w_in_t"][:, :d_inner].astype(matmul_dtype)
    w_g = params["w_in_t"][:, d_inner:].astype(matmul_dtype)
    w_o = params["w_out_t"].astype(matmul_dtype)
    dt_w = jax.nn.softmax(-params["dt"].astype(jnp.float32))
    xm = xn.astype(matmul_dtype)
    z = jnp.dot(xm, w_z, preferred_element_type=jnp.float32)
    gate = jnp.dot(xm, w_g, preferred_element_type=jnp.float32)
    z_gated = z * jax.nn.sigmoid(jnp.clip(z, -15.0, 15.0))
    gs = jnp.clip(gate, -15.0, 15.0)
    inner = (z_gated * dt_w) * (gs * jax.nn.sigmoid(gs))
    out = jnp.dot(inner.astype(matmul_dtype), w_o,
                  preferred_element_type=jnp.float32)
    return out + xf


if __name__ == "__main__":
    B, S = 2, 8
    key = jax.random.PRNGKey(0)

    # Small lane-dense configs exercising: single k-step, tiled reduction
    # (n_k=2), and a padded d_inner (384 -> 512) path.
    configs = [
        dict(d_model=128, expand_factor=2, kwargs={}),           # tk -> 256, n_k = 1
        dict(d_model=128, expand_factor=2, kwargs=dict(tk=128)),  # n_k = 2
        dict(d_model=128, expand_factor=3, kwargs=dict(tk=256)),  # d_inner 384 padded to 512
    ]

    for cfg in configs:
        key, k_x, k_p = jax.random.split(key, 3)
        x = jax.random.normal(k_x, (B, S, cfg["d_model"]), jnp.float32)
        params = init_params(k_p, cfg["d_model"], expand_factor=cfg["expand_factor"])

        out = jax.block_until_ready(svd_mamba_forward(x, params, **cfg["kwargs"]))

        assert out.shape == x.shape
        assert bool(jnp.all(jnp.isfinite(out)))
        ref_bf16 = _reference_forward_matched(x, params, jnp.bfloat16)
        ref_f32 = _reference_forward(x, params)
        # Tight check vs. a reference with identical bf16 operand rounding.
        err_m = float(jnp.max(jnp.abs(out - ref_bf16)))
        assert err_m < 2e-3, f"matched-ref max abs err {err_m}"
        # Loose check vs. exact f32 module semantics (bf16 tolerance).
        err = float(jnp.max(jnp.abs(out - ref_f32)))
        assert err < 3e-2, f"f32-ref max abs err {err}"

    print("KERNEL_OK")
</pallas_src>

<mosaic_0001>
module attributes {stable_mosaic.version = 11 : i64} {
  func.func @_mamba_kernel(%arg0: i32, %arg1: i32, %arg2: memref<8x128xf32, #tpu.memory_space<vmem>>, %arg3: memref<1x128xf32, #tpu.memory_space<vmem>>, %arg4: memref<1x128xf32, #tpu.memory_space<vmem>>, %arg5: memref<1x128x512xbf16, #tpu.memory_space<vmem>>, %arg6: memref<1x1x256xf32, #tpu.memory_space<vmem>>, %arg7: memref<1x256x128xbf16, #tpu.memory_space<vmem>>, %arg8: memref<8x128xf32, #tpu.memory_space<vmem>>, %arg9: memref<8x128xbf16, #tpu.memory_space<vmem>>) attributes {dimension_semantics = [#tpu.dimension_semantics<parallel>, #tpu.dimension_semantics<arbitrary>], iteration_bounds = array<i64: 2, 1>, scalar_prefetch = 0 : i64, scratch_operands = 1 : i64, tpu.core_type = #tpu.core_type<tc>, window_params = [{transform_indices = @transform_0, window_bounds = array<i64: 8, 128>}, {pipeline_mode = #tpu.pipeline_mode<synchronous>, transform_indices = @transform_1, window_bounds = array<i64: 1, 128>}, {pipeline_mode = #tpu.pipeline_mode<synchronous>, transform_indices = @transform_2, window_bounds = array<i64: 1, 128>}, {transform_indices = @transform_3, window_bounds = array<i64: 1, 128, 512>}, {transform_indices = @transform_4, window_bounds = array<i64: 1, 1, 256>}, {transform_indices = @transform_5, window_bounds = array<i64: 1, 256, 128>}, {transform_indices = @transform_6, window_bounds = array<i64: 8, 128>}]} {
    %c0_i32 = arith.constant 0 : i32
    %0 = arith.cmpi eq, %arg1, %c0_i32 : i32
    %1 = arith.extui %0 : i1 to i32
    %c0_i32_0 = arith.constant 0 : i32
    %2 = arith.cmpi ne, %1, %c0_i32_0 : i32
    scf.if %2 {
      %c0_22 = arith.constant 0 : index
      %c0_23 = arith.constant 0 : index
      %41 = vector.load %arg2[%c0_22, %c0_23] : memref<8x128xf32, #tpu.memory_space<vmem>>, vector<8x128xf32>
      %cst_24 = arith.constant dense<0.000000e+00> : vector<8xf32>
      %42 = vector.multi_reduction <add>, %41, %cst_24 [1] : vector<8x128xf32> to vector<8xf32>
      %43 = vector.shape_cast %42 : vector<8xf32> to vector<8x1xf32>
      %cst_25 = arith.constant 7.812500e-03 : f32
      %44 = vector.broadcast %cst_25 : f32 to vector<8x1xf32>
      %45 = arith.mulf %43, %44 : vector<8x1xf32>
      %46 = arith.mulf %41, %41 : vector<8x128xf32>
      %cst_26 = arith.constant dense<0.000000e+00> : vector<8xf32>
      %47 = vector.multi_reduction <add>, %46, %cst_26 [1] : vector<8x128xf32> to vector<8xf32>
      %48 = vector.shape_cast %47 : vector<8xf32> to vector<8x1xf32>
      %cst_27 = arith.constant 7.812500e-03 : f32
      %49 = vector.broadcast %cst_27 : f32 to vector<8x1xf32>
      %50 = arith.mulf %48, %49 : vector<8x1xf32>
      %51 = arith.mulf %45, %45 : vector<8x1xf32>
      %52 = arith.subf %50, %51 : vector<8x1xf32>
      %53 = vector.broadcast %45 : vector<8x1xf32> to vector<8x128xf32>
      %54 = arith.subf %41, %53 : vector<8x128xf32>
      %cst_28 = arith.constant 9.99999974E-6 : f32
      %55 = vector.broadcast %cst_28 : f32 to vector<8x1xf32>
      %56 = arith.addf %52, %55 : vector<8x1xf32>
      %57 = math.rsqrt %56 : vector<8x1xf32>
      %58 = vector.broadcast %57 : vector<8x1xf32> to vector<8x128xf32>
      %59 = arith.mulf %54, %58 : vector<8x128xf32>
      %c0_29 = arith.constant 0 : index
      %c0_30 = arith.constant 0 : index
      %60 = vector.load %arg3[%c0_29, %c0_30] : memref<1x128xf32, #tpu.memory_space<vmem>>, vector<1x128xf32>
      %61 = vector.broadcast %60 : vector<1x128xf32> to vector<8x128xf32>
      %62 = arith.mulf %59, %61 : vector<8x128xf32>
      %c0_31 = arith.constant 0 : index
      %c0_32 = arith.constant 0 : index
      %63 = vector.load %arg4[%c0_31, %c0_32] : memref<1x128xf32, #tpu.memory_space<vmem>>, vector<1x128xf32>
      %64 = vector.broadcast %63 : vector<1x128xf32> to vector<8x128xf32>
      %65 = arith.addf %62, %64 : vector<8x128xf32>
      %66 = arith.truncf %65 : vector<8x128xf32> to vector<8x128xbf16>
      %c0_33 = arith.constant 0 : index
      %c0_34 = arith.constant 0 : index
      %67 = vector.load %arg9[%c0_33, %c0_34] : memref<8x128xbf16, #tpu.memory_space<vmem>>, vector<8x128xbf16>
      tpu.vector_store %arg9[%c0_33, %c0_34], %66 {strides = array<i32>} : memref<8x128xbf16, #tpu.memory_space<vmem>>, vector<8x128xbf16>,
      %c0_35 = arith.constant 0 : index
      %c0_36 = arith.constant 0 : index
      %68 = vector.load %arg8[%c0_35, %c0_36] : memref<8x128xf32, #tpu.memory_space<vmem>>, vector<8x128xf32>
      tpu.vector_store %arg8[%c0_35, %c0_36], %41 {strides = array<i32>} : memref<8x128xf32, #tpu.memory_space<vmem>>, vector<8x128xf32>,
    } else {
    }
    %c0 = arith.constant 0 : index
    %c0_1 = arith.constant 0 : index
    %3 = vector.load %arg9[%c0, %c0_1] : memref<8x128xbf16, #tpu.memory_space<vmem>>, vector<8x128xbf16>
    %c0_2 = arith.constant 0 : index
    %c0_3 = arith.constant 0 : index
    %c0_4 = arith.constant 0 : index
    %4 = vector.load %arg5[%c0_2, %c0_3, %c0_4] : memref<1x128x512xbf16, #tpu.memory_space<vmem>>, vector<1x128x512xbf16>
    %5 = vector.shape_cast %4 : vector<1x128x512xbf16> to vector<128x512xbf16>
    %cst = arith.constant dense<0.000000e+00> : vector<8x512xf32>
    %6 = tpu.matmul %3, %5, %cst {dimension_numbers = #tpu.dot_dimension_numbers<[1], [0], [0], [1], [0, 0, 1, 1], [], []>} : vector<8x128xbf16>, vector<128x512xbf16>, vector<8x512xf32> -> vector<8x512xf32>
    %7 = vector.extract_strided_slice %6 {offsets = [0, 0], sizes = [8, 256], strides = [1, 1]} : vector<8x512xf32> to vector<8x256xf32>
    %8 = vector.extract_strided_slice %6 {offsets = [0, 256], sizes = [8, 256], strides = [1, 1]} : vector<8x512xf32> to vector<8x256xf32>
    %cst_5 = arith.constant -1.500000e+01 : f32
    %cst_6 = arith.constant 1.500000e+01 : f32
    %9 = vector.broadcast %cst_5 : f32 to vector<8x256xf32>
    %10 = arith.maximumf %9, %7 : vector<8x256xf32>
    %11 = vector.broadcast %cst_6 : f32 to vector<8x256xf32>
    %12 = arith.minimumf %11, %10 : vector<8x256xf32>
    %13 = arith.negf %12 : vector<8x256xf32>
    %14 = math.exp %13 : vector<8x256xf32>
    %cst_7 = arith.constant 1.000000e+00 : f32
    %15 = vector.broadcast %cst_7 : f32 to vector<8x256xf32>
    %16 = arith.addf %15, %14 : vector<8x256xf32>
    %17 = arith.divf %15, %16 : vector<8x256xf32>
    %18 = arith.mulf %7, %17 : vector<8x256xf32>
    %cst_8 = arith.constant -1.500000e+01 : f32
    %cst_9 = arith.constant 1.500000e+01 : f32
    %19 = vector.broadcast %cst_8 : f32 to vector<8x256xf32>
    %20 = arith.maximumf %19, %8 : vector<8x256xf32>
    %21 = vector.broadcast %cst_9 : f32 to vector<8x256xf32>
    %22 = arith.minimumf %21, %20 : vector<8x256xf32>
    %c0_10 = arith.constant 0 : index
    %c0_11 = arith.constant 0 : index
    %c0_12 = arith.constant 0 : index
    %23 = vector.load %arg6[%c0_10, %c0_11, %c0_12] : memref<1x1x256xf32, #tpu.memory_space<vmem>>, vector<1x1x256xf32>
    %24 = vector.shape_cast %23 : vector<1x1x256xf32> to vector<1x256xf32>
    %25 = vector.broadcast %24 : vector<1x256xf32> to vector<8x256xf32>
    %26 = arith.mulf %18, %25 : vector<8x256xf32>
    %27 = arith.negf %22 : vector<8x256xf32>
    %28 = math.exp %27 : vector<8x256xf32>
    %cst_13 = arith.constant 1.000000e+00 : f32
    %29 = vector.broadcast %cst_13 : f32 to vector<8x256xf32>
    %30 = arith.addf %29, %28 : vector<8x256xf32>
    %31 = arith.divf %29, %30 : vector<8x256xf32>
    %32 = arith.mulf %22, %31 : vector<8x256xf32>
    %33 = arith.mulf %26, %32 : vector<8x256xf32>
    %c0_14 = arith.constant 0 : index
    %c0_15 = arith.constant 0 : index
    %34 = vector.load %arg8[%c0_14, %c0_15] : memref<8x128xf32, #tpu.memory_space<vmem>>, vector<8x128xf32>
    %35 = arith.truncf %33 : vector<8x256xf32> to vector<8x256xbf16>
    %c0_16 = arith.constant 0 : index
    %c0_17 = arith.constant 0 : index
    %c0_18 = arith.constant 0 : index
    %36 = vector.load %arg7[%c0_16, %c0_17, %c0_18] : memref<1x256x128xbf16, #tpu.memory_space<vmem>>, vector<1x256x128xbf16>
    %37 = vector.shape_cast %36 : vector<1x256x128xbf16> to vector<256x128xbf16>
    %cst_19 = arith.constant dense<0.000000e+00> : vector<8x128xf32>
    %38 = tpu.matmul %35, %37, %cst_19 {dimension_numbers = #tpu.dot_dimension_numbers<[1], [0], [0], [1], [0, 0, 1, 1], [], []>} : vector<8x256xbf16>, vector<256x128xbf16>, vector<8x128xf32> -> vector<8x128xf32>
    %39 = arith.addf %34, %38 : vector<8x128xf32>
    %c0_20 = arith.constant 0 : index
    %c0_21 = arith.constant 0 : index
    %40 = vector.load %arg8[%c0_20, %c0_21] : memref<8x128xf32, #tpu.memory_space<vmem>>, vector<8x128xf32>
    tpu.vector_store %arg8[%c0_20, %c0_21], %39 {strides = array<i32>} : memref<8x128xf32, #tpu.memory_space<vmem>>, vector<8x128xf32>,
    return
  }
  func.func @transform_0(%arg0: i32, %arg1: i32) -> (i32, i32) {
    %c0_i32 = arith.constant 0 : i32
    %c0_i32_0 = arith.constant 0 : i32
    return %arg0, %c0_i32 : i32, i32
  }
  func.func @transform_1(%arg0: i32, %arg1: i32) -> (i32, i32) {
    %c0_i32 = arith.constant 0 : i32
    %c0_i32_0 = arith.constant 0 : i32
    %c0_i32_1 = arith.constant 0 : i32
    return %c0_i32, %c0_i32_0 : i32, i32
  }
  func.func @transform_2(%arg0: i32, %arg1: i32) -> (i32, i32) {
    %c0_i32 = arith.constant 0 : i32
    %c0_i32_0 = arith.constant 0 : i32
    %c0_i32_1 = arith.constant 0 : i32
    return %c0_i32, %c0_i32_0 : i32, i32
  }
  func.func @transform_3(%arg0: i32, %arg1: i32) -> (i32, i32, i32) {
    %c0_i32 = arith.constant 0 : i32
    %c0_i32_0 = arith.constant 0 : i32
    %c0_i32_1 = arith.constant 0 : i32
    return %arg1, %c0_i32, %c0_i32_0 : i32, i32, i32
  }
  func.func @transform_4(%arg0: i32, %arg1: i32) -> (i32, i32, i32) {
    %c0_i32 = arith.constant 0 : i32
    %c0_i32_0 = arith.constant 0 : i32
    %c0_i32_1 = arith.constant 0 : i32
    return %arg1, %c0_i32, %c0_i32_0 : i32, i32, i32
  }
  func.func @transform_5(%arg0: i32, %arg1: i32) -> (i32, i32, i32) {
    %c0_i32 = arith.constant 0 : i32
    %c0_i32_0 = arith.constant 0 : i32
    %c0_i32_1 = arith.constant 0 : i32
    return %arg1, %c0_i32, %c0_i32_0 : i32, i32, i32
  }
  func.func @transform_6(%arg0: i32, %arg1: i32) -> (i32, i32) {
    %c0_i32 = arith.constant 0 : i32
    %c0_i32_0 = arith.constant 0 : i32
    return %arg0, %c0_i32 : i32, i32
  }
}

</mosaic_0001>

<bundles_post_ra>
// kernel: tpu_custom_call.1
= control target key start
LH: loop header
LB: loop body
LE: loop exit
PB: predicated region body
PF: predicated region fallthrough
CT: control target
= control target key end

     0   :  { %11 = vsyncpa [#allocation4], 0  ;;  %s1765_s0 = inlined_call_operand.hbm [shape: f32[16,128], index: 0, kind: input, shape index: {}]   ;;  %s1766_s1 = inlined_call_operand.vmem [shape: f32[1,128], index: 1, kind: input, shape index: {}]   ;;  %s1767_s2 = inlined_call_operand.vmem [shape: f32[1,128], index: 2, kind: input, shape index: {}]   ;;  %s1768_s3 = inlined_call_operand.hbm [shape: bf16[1,128,512], index: 3, kind: input, shape index: {}]   ;;  %s1769_s4 = inlined_call_operand.vmem [shape: f32[1,1,256], index: 4, kind: input, shape index: {}]   ;;  %s1770_s5 = inlined_call_operand.hbm [shape: bf16[1,256,128], index: 5, kind: input, shape index: {}]   ;;  %s1771_s6 = inlined_call_operand.hbm [shape: f32[16,128], index: 6, kind: output, shape index: {}]  }
   0x1   :  { %13 = vsyncpa [#allocation4 + $0x1], 0 }
   0x2   :  { %14 = vsyncpa [#allocation7], 0 }
   0x3   :  { %15 = vsyncpa [#allocation5], 0 }
   0x4   :  { %17 = vsyncpa [#allocation5 + $0x1], 0  ;;  %s1495_s21 = smov 0   ;;  %s1497_s22 = smov 0  }
   0x5   :  { %s1499_s23 = smov 0   ;;  %s1501_s24 = smov 0  }
   0x6   :  { %s1503_s25 = smov 0   ;;  %s1505_s26 = smov 0  }
   0x7 LB: > { %s1009_s27 = sadd.s32 4294967295, %s1449_s26   ;;  %s1010_s28 = sadd.s32 4294967294, %s1449_s26   ;;  %s1449_s26 = sphi %s1505_s26, %s23_s26   ;;  %s1445_s25 = sphi %s1503_s25, %s1796_s25   ;;  %s1441_s24 = sphi %s1501_s24, %s1795_s24   ;;  %s1437_s23 = sphi %s1499_s23, %s1794_s23   ;;  %s1433_s22 = sphi %s1497_s22, %s1793_s22   ;;  %s1429_s21 = sphi %s1495_s21, %s1792_s21  }
   0x8   : > { %p55_p0 = scmp.ne.s32.totalorder %s1433_s22, %s1429_s21  ;;  %p1529_p1 = scmp.eq.s32.totalorder %s1009_s27, 0 }
   0x9   : > { %p1533_p2 = scmp.eq.s32.totalorder %s1009_s27, 1  ;;  %p205_p3 = scmp.eq.s32.totalorder %s1010_s28, 1 }
   0xa   : > { %s1777_s29 = scalar_select %p1529_p1, 1, 0 }
   0xb   : > { %p1539_p4 = por %p1529_p1, %p55_p0  ;;  %p1011_p5 = scmp.ge.s32.totalorder %s1449_s26, 1 }
   0xc   : > { %p1544_p6 = por %p205_p3, %p55_p0  ;;  %p212_p7 = scmp.lt.s32.totalorder %s1449_s26, 3 }
   0xd   : > { %s1779_s7 = scalar_select %p1539_p4, 1, 0 }
   0xe   : > { %s1780_s8 = scalar_select %p1544_p6, 1, 0 }
   0xf   : > { %p1549_p8 = pnand %p1011_p5, %p212_p7  ;;  %s1451_s10 = smov [#allocation6]  }
  0x10   : > { %1781 = sst [smem:[#allocation13_spill]] %s1780_s8  ;;  %s233_s11 = sshll.u32 %s1451_s10, 4  ;;  %s1553_s11 = int_to_ptr.vmem [resolvable:$true] %s233_s11 }
  0x11   : > { %p1119_p9 = pneg %p1549_p8  ;;  %s1452_s13 = smov [#allocation8]  }
  0x12   : > { %s256_s14 = sshll.u32 %s1452_s13, 4  ;;  %s1277_s17 = scalar_lea.hbm %s1768_s3, 4096  ;;  %s1564_s14 = int_to_ptr.vmem [resolvable:$true] %s256_s14 }
  0x13   : > { %p1560_p11 = pnand %p1119_p9, %p1529_p1  ;;  %p1278_p12 = scmp.ne.s32.totalorder %s1768_s3, %s1277_s17 }
  0x14   : > { %p1284_p5 = scmp.lt.u32.totalorder %s1277_s17, %s1768_s3 }
  0x15   : > { %p1279_p13 = pneg %p1560_p11 }
  0x17   : > { %p1280_p0 = pnand %p1279_p13, %p1278_p12 }
  0x19   : > { %p1281_p3 = pneg %p1280_p0 }
  0x1b   : > { %p1286_p7 = pnand %p1284_p5, %p1281_p3 }
  0x1d   : > { %1289 = shalt.err (!%p1286_p7)
}
  0x1e   : > { %s1290_s28 = scalar_lea.vmem %s1553_s11, 4096  ;;  %p1298_p1 = scmp.lt.s32.totalorder %s1553_s11, %s1553_s11 }
  0x1f   : > { %p1291_p9 = scmp.ne.s32.totalorder %s1553_s11, %s1290_s28  ;;  %p1299_p12 = scmp.lt.s32.totalorder %s1290_s28, %s1290_s28 }
  0x21   : > { %p1293_p10 = pnand %p1291_p9, %p1279_p13  ;;  %p1300_p0 = por %p1299_p12, %p1298_p1 }
  0x23   : > { %p1294_p6 = pneg %p1293_p10 }
  0x25   : > { %p1301_p4 = pnand %p1300_p0, %p1294_p6 }
  0x27   : > { %1304 = shalt.err (!%p1301_p4)
}
  0x28   : > { %s1453_s10 = smov 256   ;;  %s1454_s13 = smov 16  }
  0x29   : > { %1122 = dma.hbm_to_vmem [thread:$0]  (!%p1560_p11), %s1768_s3, 4096, %s1553_s11, [#allocation7], %s1453_s10, %s1453_s10, %s1454_s13  }
  0x2a   : > { %s1305_s19 = scalar_lea.hbm %s1770_s5, 2048 }
  0x2b   : > { %p1306_p1 = scmp.ne.s32.totalorder %s1770_s5, %s1305_s19  ;;  %p1312_p10 = scmp.lt.u32.totalorder %s1305_s19, %s1770_s5 }
  0x2d   : > { %p1308_p4 = pnand %p1306_p1, %p1279_p13 }
  0x2f   : > { %p1309_p6 = pneg %p1308_p4 }
  0x31   : > { %p1314_p3 = pnand %p1312_p10, %p1309_p6 }
  0x33   : > { %1317 = shalt.err (!%p1314_p3)
}
  0x34   : > { %s1318_s11 = scalar_lea.vmem %s1564_s14, 2048  ;;  %p1326_p12 = scmp.lt.s32.totalorder %s1564_s14, %s1564_s14 }
  0x35   : > { %p1319_p5 = scmp.ne.s32.totalorder %s1564_s14, %s1318_s11  ;;  %p1327_p0 = scmp.lt.s32.totalorder %s1318_s11, %s1318_s11 }
  0x37   : > { %p1321_p7 = pnand %p1319_p5, %p1279_p13  ;;  %p1328_p1 = por %p1327_p0, %p1326_p12 }
  0x39   : > { %p1322_p9 = pneg %p1321_p7 }
  0x3b   : > { %p1329_p4 = pnand %p1328_p1, %p1322_p9 }
  0x3d   : > { %1332 = shalt.err (!%p1329_p4)
}
  0x3e   : > { %s1455_s8 = smov 64   ;;  %s1456_s10 = smov 4  }
  0x3f   : > { %1125 = dma.hbm_to_vmem [thread:$0]  (!%p1560_p11), %s1770_s5, 2048, %s1564_s14, [#allocation7], %s1455_s8, %s1455_s8, %s1456_s10  }
  0x40   : > { %s35_s16 = sadd.s32 1, %s1445_s25  ;;  %s42_s17 = sadd.s32 1, %s1437_s23 }
  0x41   : > { %p37_p13 = scmp.ge.s32.totalorder %s35_s16, 2  ;;  %p49_p6 = scmp.ne.s32.totalorder %s1437_s23, %s1433_s22 }
  0x42   : > { %p50_p10 = scmp.eq.s32.totalorder %s1449_s26, 0  ;;  %p1136_p3 = scmp.lt.s32.totalorder %s1449_s26, 2 }
  0x43   : > { %s1798_s16 = smov (%p37_p13, %s35_s16), 0  ;;  %p1628_p7 = por %p1533_p2, %p49_p6 }
  0x44   : > { %p51_p5 = por %p50_p10, %p49_p6  ;;  %s39_s12 = ssub.s32 %s1445_s25, %s1798_s16 }
  0x45   : > { %s1784_s18 = scalar_select %p1628_p7, 1, 0 }
  0x46   : > { %s270_s19 = sand.u32 1, %s1437_s23   ;;  %p40_p9 = scmp.eq.s32.totalorder %s39_s12, 0 }
  0x47   : > { %s1016_s14 = sshll.u32 %s270_s19, 3  ;;  %s1017_s20 = sshll.u32 %s1445_s25, 7 }
  0x48   : > { %s1637_s27 = scalar_select %p40_p9, %s1437_s23, %s42_s17  }
  0x49   : > { %s1642_s8 = scalar_lea.hbm %s1765_s0, %s1017_s20  ;;  %s274_s30 = scalar_lea.vmem [#allocation3], %s1016_s14 }
  0x4a   : > { %s281_s10 = sshll.u32 %s274_s30, 4  ;;  %p1646_p2 = pnand %p1136_p3, %p51_p5  ;;  %s1650_s10 = int_to_ptr.vmem [resolvable:$true] %s281_s10 }
  0x4b   : > { %s271_s15 = scalar_lea.sflag [#allocation4], %s270_s19  ;;  %s1333_s17 = scalar_lea.hbm %s1642_s8, 128 }
  0x4c   : > { %p1334_p11 = scmp.ne.s32.totalorder %s1642_s8, %s1333_s17  ;;  %p1335_p12 = pneg %p1646_p2 }
  0x4d   : > { %s1338_s20 = scalar_lea.hbm %s1765_s0, 256  ;;  %p1339_p4 = scmp.lt.u32.totalorder %s1642_s8, %s1765_s0 }
  0x4e   : > { %p1336_p0 = pnand %p1335_p12, %p1334_p11  ;;  %p1340_p13 = scmp.lt.u32.totalorder %s1338_s20, %s1333_s17 }
  0x4f   : > { %p1342_p10 = scmp.lt.u32.totalorder %s1333_s17, %s1642_s8 }
  0x50   : > { %p1337_p1 = pneg %p1336_p0  ;;  %p1341_p6 = por %p1340_p13, %p1339_p4 }
  0x52   : > { %p1343_p3 = por %p1342_p10, %p1341_p6 }
  0x54   : > { %p1344_p5 = pnand %p1343_p3, %p1337_p1 }
  0x56   : > { %1347 = shalt.err (!%p1344_p5)
}
  0x57   : > { %s1348_s19 = scalar_lea.vmem %s1650_s10, 128  ;;  %s1457_s30 = smov [#allocation3]  }
  0x58   : > { %p1349_p9 = scmp.ne.s32.totalorder %s1650_s10, %s1348_s19  ;;  %s1353_s12 = sshll.u32 %s1457_s30, 4  ;;  %s1354_s12 = int_to_ptr.vmem [resolvable:$false] %s1353_s12 }
  0x59   : > { %s1355_s14 = scalar_lea.vmem %s1354_s12, 256  ;;  %p1356_p7 = scmp.lt.s32.totalorder %s1650_s10, %s1354_s12 }
  0x5a   : > { %p1351_p11 = pnand %p1349_p9, %p1335_p12  ;;  %p1357_p4 = scmp.lt.s32.totalorder %s1355_s14, %s1348_s19 }
  0x5c   : > { %p1352_p0 = pneg %p1351_p11  ;;  %p1358_p13 = por %p1357_p4, %p1356_p7 }
  0x5e   : > { %p1359_p6 = pnand %p1358_p13, %p1352_p0 }
  0x60   : > { %1362 = shalt.err (!%p1359_p6)
}
  0x61   : > { %1129 = dma.hbm_to_vmem [thread:$0]  (!%p1646_p2), %s1642_s8, 128, %s1650_s10, %s271_s15  }
  0x62   : > { %290 = sbr.rel (%p1549_p8) target bundleno = 771 (0x303), region = 44  ;;  %s1680_s17 = sand.u32 (!%p1549_p8), 1, %s1433_s22  }
  0x63   : > { %s1019_s20 = sshll.u32 (!%p1549_p8), %s1680_s17, 3  ;;  %s293_s28 = scalar_lea.sflag (!%p1549_p8), [#allocation4], %s1680_s17 }
  0x64   : > { %s296_s11 = scalar_lea.vmem (!%p1549_p8), [#allocation3], %s1019_s20  ;;  %p1786_p7 = scmp.ne.s32.totalorder (!%p1549_p8), %s1779_s7, 0 }
  0x69   : > { %1416 = dma.done.wait (%p1786_p7), %s293_s28, 128  }
  0x6a   : > { %1418 = vsyncadd (%p1786_p7), %s293_s28, 4294967168  ;;  %p1787_p2 = scmp.ne.s32.totalorder %s1777_s29, 0 }
  0x6c   : > { %1420 = dma.done.wait (%p1787_p2), [#allocation7], 6144  }
  0x6d   : > { %1422 = vsyncadd (%p1787_p2), [#allocation7], 4294961152  ;;  %v1694_v0 = vld [vmem:[%s296_s11] sm:$0xff]  ;;  %v1458_v34 = vmov 0   ;;  %v1023_v44 = vld [vmem:[%s1766_s1] ss:$0 sm:$0xff] }
  0x6e   : > { %347 = vadd.xlane.f32.xlu0 %v1694_v0  ;;  %v350_v1 = vmul.f32 %v1694_v0, %v1694_v0  ;;  %v1195_v2 = vld [vmem:[#allocation6 + $0x4] ss:$16 sps:$4 sm:$0xff]   ;;  %v1197_v3 = vld [vmem:[#allocation6 + $0xc] ss:$16 sps:$4 sm:$0xff]   ;;  %v1199_v4 = vld [vmem:[#allocation6] ss:$16 sps:$4 sm:$0xff]   ;;  %604 = vmatprep.mubr.bf16.mxu0 %v1458_v34 }
  0x6f   : > { %v1200_v5 = vld [vmem:[#allocation6 + $0x8] ss:$16 sps:$4 sm:$0xff]   ;;  %572 = vmatprep.subr.bf16.mxu0 %v1195_v2  ;;  %613 = vmatprep.subr.bf16.mxu1 %v1197_v3  ;;  %v1201_v6 = vld [vmem:[#allocation6 + $0x24] ss:$16 sps:$4 sm:$0xff]   ;;  %v1203_v7 = vld [vmem:[#allocation6 + $0x2c] ss:$16 sps:$4 sm:$0xff]  }
  0x70   : > { %573 = vmatpush1.bf16.msra.mxu0 %v1199_v4  ;;  %614 = vmatpush1.bf16.msra.mxu1 %v1200_v5  ;;  %v1205_v8 = vld [vmem:[#allocation6 + $0x20] ss:$16 sps:$4 sm:$0xff]   ;;  %v1206_v9 = vld [vmem:[#allocation6 + $0x28] ss:$16 sps:$4 sm:$0xff]   ;;  %v1207_v10 = vld [vmem:[#allocation6 + $0x44] ss:$16 sps:$4 sm:$0xff]  }
  0x71   : > { %574 = vmatprep.subr.bf16.mxu0 %v1201_v6  ;;  %615 = vmatprep.subr.bf16.mxu1 %v1203_v7  ;;  %v1209_v11 = vld [vmem:[#allocation6 + $0x4c] ss:$16 sps:$4 sm:$0xff]   ;;  %v1211_v12 = vld [vmem:[#allocation6 + $0x40] ss:$16 sps:$4 sm:$0xff]   ;;  %v1212_v13 = vld [vmem:[#allocation6 + $0x48] ss:$16 sps:$4 sm:$0xff]  }
  0x72   : > { %351 = vadd.xlane.f32.xlu0 %v350_v1  ;;  %v1213_v14 = vld [vmem:[#allocation6 + $0x64] ss:$16 sps:$4 sm:$0xff]   ;;  %v1215_v15 = vld [vmem:[#allocation6 + $0x6c] ss:$16 sps:$4 sm:$0xff]   ;;  %v1217_v16 = vld [vmem:[#allocation6 + $0x60] ss:$16 sps:$4 sm:$0xff]   ;;  %645 = vmatprep.mubr.bf16.mxu1 %v1458_v34 }
  0x73   : > { %v1218_v17 = vld [vmem:[#allocation6 + $0x68] ss:$16 sps:$4 sm:$0xff]   ;;  %v1219_v18 = vld [vmem:[#allocation6 + $0x84] ss:$16 sps:$4 sm:$0xff]   ;;  %v1221_v19 = vld [vmem:[#allocation6 + $0x8c] ss:$16 sps:$4 sm:$0xff]  }
  0x74   : > { %575 = vmatpush1.bf16.msra.mxu0 %v1205_v8  ;;  %616 = vmatpush1.bf16.msra.mxu1 %v1206_v9  ;;  %v1223_v20 = vld [vmem:[#allocation6 + $0x80] ss:$16 sps:$4 sm:$0xff]   ;;  %v1224_v21 = vld [vmem:[#allocation6 + $0x88] ss:$16 sps:$4 sm:$0xff]   ;;  %v1225_v22 = vld [vmem:[#allocation6 + $0xa4] ss:$16 sps:$4 sm:$0xff]  }
  0x75   : > { %576 = vmatprep.subr.bf16.mxu0 %v1207_v10  ;;  %617 = vmatprep.subr.bf16.mxu1 %v1209_v11  ;;  %v1227_v23 = vld [vmem:[#allocation6 + $0xac] ss:$16 sps:$4 sm:$0xff]   ;;  %v1229_v24 = vld [vmem:[#allocation6 + $0xa0] ss:$16 sps:$4 sm:$0xff]   ;;  %v1230_v25 = vld [vmem:[#allocation6 + $0xa8] ss:$16 sps:$4 sm:$0xff]  }
  0x76   : > { %v1231_v26 = vld [vmem:[#allocation6 + $0xc4] ss:$16 sps:$4 sm:$0xff]   ;;  %v1233_v27 = vld [vmem:[#allocation6 + $0xcc] ss:$16 sps:$4 sm:$0xff]   ;;  %v1235_v28 = vld [vmem:[#allocation6 + $0xc0] ss:$16 sps:$4 sm:$0xff]  }
  0x77   : > { %v1236_v29 = vld [vmem:[#allocation6 + $0xc8] ss:$16 sps:$4 sm:$0xff]   ;;  %v1237_v30 = vld [vmem:[#allocation6 + $0xe4] ss:$16 sps:$4 sm:$0xff]   ;;  %v1239_v31 = vld [vmem:[#allocation6 + $0xec] ss:$16 sps:$4 sm:$0xff]  }
  0x78   : > { %577 = vmatpush1.bf16.msra.mxu0 %v1211_v12  ;;  %618 = vmatpush1.bf16.msra.mxu1 %v1212_v13  ;;  %v1241_v32 = vld [vmem:[#allocation6 + $0xe0] ss:$16 sps:$4 sm:$0xff]   ;;  %v1242_v33 = vld [vmem:[#allocation6 + $0xe8] ss:$16 sps:$4 sm:$0xff]   ;;  %v1024_v46 = vld [vmem:[%s1767_s2] ss:$0 sm:$0xff] }
  0x79   : > { %578 = vmatprep.subr.bf16.mxu0 %v1213_v14  ;;  %619 = vmatprep.subr.bf16.mxu1 %v1215_v15  ;;  %v1243_v51 = vld [vmem:[#allocation8 + $0x40] sm:$0xff]   ;;  %v1245_v53 = vld [vmem:[#allocation8 + $0x48] sm:$0xff]   ;;  %v1247_v55 = vld [vmem:[#allocation8 + $0x50] sm:$0xff]   ;;  %s1082_s15 = sshll.u32 %s1441_s24, 7  ;;  %s336_s19 = scalar_lea.vmem [#allocation9], %s1019_s20 }
  0x7a   : > { %v1244_v52 = vld [vmem:[#allocation8] sm:$0xff]   ;;  %v1246_v54 = vld [vmem:[#allocation8 + $0x8] sm:$0xff]   ;;  %v1248_v56 = vld [vmem:[#allocation8 + $0x10] sm:$0xff]   ;;  %s893_s30 = sshll.u32 %s336_s19, 4  ;;  %s1716_s28 = scalar_lea.hbm %s1771_s6, %s1082_s15  ;;  %s1718_s30 = int_to_ptr.vmem [resolvable:$true] %s893_s30 }
  0x7b   : > { %v1249_v57 = vld [vmem:[#allocation8 + $0x58] sm:$0xff]   ;;  %v1251_v59 = vld [vmem:[#allocation8 + $0x60] sm:$0xff]   ;;  %v1253_v61 = vld [vmem:[#allocation8 + $0x68] sm:$0xff]   ;;  %s880_s24 = scalar_lea.sflag [#allocation5], %s1680_s17  ;;  %s1363_s11 = scalar_lea.vmem %s1718_s30, 128 }
  0x7c   : > { %579 = vmatpush1.bf16.msra.mxu0 %v1217_v16  ;;  %620 = vmatpush1.bf16.msra.mxu1 %v1218_v17  ;;  %v1250_v58 = vld [vmem:[#allocation8 + $0x18] sm:$0xff]   ;;  %v1252_v60 = vld [vmem:[#allocation8 + $0x20] sm:$0xff]   ;;  %v1254_v62 = vld [vmem:[#allocation8 + $0x28] sm:$0xff]   ;;  %p1364_p8 = scmp.ne.s32.totalorder %s1718_s30, %s1363_s11  ;;  %p1788_p12 = scmp.ne.s32.totalorder %s1784_s18, 0 }
  0x7d   : > { %580 = vmatprep.subr.bf16.mxu0 %v1219_v18  ;;  %621 = vmatprep.subr.bf16.mxu1 %v1221_v19  ;;  %v1255_v63 = vld [vmem:[#allocation8 + $0x70] sm:$0xff]   ;;  %v1257_v2 = vld [vmem:[#allocation8 + $0x78] sm:$0xff]   ;;  %s1459_s20 = smov [#allocation9]  }
  0x7e   : > { %v1256_v1 = vld [vmem:[#allocation8 + $0x30] sm:$0xff]   ;;  %v1258_v3 = vld [vmem:[#allocation8 + $0x38] sm:$0xff]   ;;  %p1365_p1 = pnand %p1364_p8, %p1788_p12  ;;  %s1367_s29 = sshll.u32 %s1459_s20, 4  ;;  %s1368_s29 = int_to_ptr.vmem [resolvable:$false] %s1367_s29 }
  0x7f   : > { %s1369_s7 = scalar_lea.vmem %s1368_s29, 256  ;;  %p1370_p3 = scmp.lt.s32.totalorder %s1718_s30, %s1368_s29 }
  0x80   : > { %581 = vmatpush1.bf16.msra.mxu0 %v1223_v20  ;;  %622 = vmatpush1.bf16.msra.mxu1 %v1224_v21  ;;  %v678_v21 = vlaneseq  ;;  %p1366_p10 = pneg %p1365_p1  ;;  %p1371_p5 = scmp.lt.s32.totalorder %s1369_s7, %s1363_s11 }
  0x81   : > { %582 = vmatprep.subr.bf16.mxu0 %v1225_v22  ;;  %623 = vmatprep.subr.bf16.mxu1 %v1227_v23 }
  0x82   : > { %p1372_p9 = por %p1371_p5, %p1370_p3 }
  0x84   : > { %583 = vmatpush1.bf16.msra.mxu0 %v1229_v24  ;;  %624 = vmatpush1.bf16.msra.mxu1 %v1230_v25  ;;  %p1373_p11 = pnand %p1372_p9, %p1366_p10 }
  0x85   : > { %584 = vmatprep.subr.bf16.mxu0 %v1231_v26  ;;  %625 = vmatprep.subr.bf16.mxu1 %v1233_v27 }
  0x88   : > { %585 = vmatpush1.bf16.msra.mxu0 %v1235_v28  ;;  %626 = vmatpush1.bf16.msra.mxu1 %v1236_v29  ;;  %v679_v28 = vshrl.u32 %v678_v21, 7 }
  0x89   : > { %586 = vmatprep.subr.bf16.mxu0 %v1237_v30  ;;  %627 = vmatprep.subr.bf16.mxu1 %v1239_v31  ;;  %v676_v31 = vld [vmem:[%s1769_s4] sm:$0x3] }
  0x8a   : > { %v680_v30 = vsub.s32 0, %v679_v28 }
  0x8c   : > { %587 = vmatpush1.bf16.msra.mxu0 %v1241_v32  ;;  %628 = vmatpush1.bf16.msra.mxu1 %v1242_v33  ;;  %v684_v32 = vsub.s32 1, %v679_v28  ;;  %v681_v33 = vrot.slane %v676_v31, %v680_v30 }
  0x8d   : > { %1085 = vmatprep.subr.bf16.mxu0 %v1243_v51 }
  0xfb   : > { %v348_v35 = vpop.xlane.xlu0 %347 }
  0xfc   : > { %v349_v36 = vmul.f32 0.0078125, %v348_v35 }
  0xfe   : > { %v354_v38 = vmul.f32 %v349_v36, %v349_v36  ;;  %v356_v42 = vsub.f32 %v1694_v0, %v349_v36 }
  0xff   : > { %v352_v37 = vpop.xlane.xlu0 %351 }
 0x100   : > { %v353_v39 = vmul.f32 0.0078125, %v352_v37  ;;  %v685_v37 = vrot.slane %v676_v31, %v684_v32 }
 0x102   : > { %v355_v40 = vsub.f32 %v353_v39, %v354_v38 }
 0x104   : > { %v357_v41 = vadd.f32 1e-05, %v355_v40 }
 0x106   : > { %1259 = vrsqrt.f32 %v357_v41 }
 0x110   : > { %v1260_v43 = vpop.eup %1259 }
 0x111   : > { %v359_v45 = vmul.f32 %v1260_v43, %v356_v42 }
 0x113   : > { %v367_v47 = vmul.f32 %v1023_v44, %v359_v45 }
 0x115   : > { %v375_v48 = vadd.f32 %v1024_v46, %v367_v47 }
 0x117   : > { %v376_v49 = vpack.c.bf16 %v375_v48, %v375_v48 }
 0x119   : > { %377 = vst [vmem:[#allocation2] sm:$0xf] %v376_v49 }
 0x120   : > { %v379_v50 = vld [vmem:[#allocation2] sm:$0xf] }
 0x121   : > { %605 = vmatmul.mubr.bf16.vlgmr.msra.gmra.mrb[0].mxu0 %v379_v50  ;;  %646 = vmatmul.mubr.bf16.vlgmr.msra.gmra.mrb[0].mxu1 %v379_v50 }
 0x122   : > { %1086 = vmatpush3.bf16.msra.mxu0 %v1244_v52 }
 0x123   : > { %1087 = vmatprep.subr.bf16.mxu0 %v1245_v53 }
 0x126   : > { %1088 = vmatpush3.bf16.msra.mxu0 %v1246_v54 }
 0x127   : > { %1089 = vmatprep.subr.bf16.mxu0 %v1247_v55 }
 0x12a   : > { %1090 = vmatpush3.bf16.msra.mxu0 %v1248_v56 }
 0x12b   : > { %1091 = vmatprep.subr.bf16.mxu0 %v1249_v57 }
 0x12e   : > { %1092 = vmatpush3.bf16.msra.mxu0 %v1250_v58 }
 0x12f   : > { %1093 = vmatprep.subr.bf16.mxu0 %v1251_v59 }
 0x132   : > { %1094 = vmatpush3.bf16.msra.mxu0 %v1252_v60 }
 0x133   : > { %1095 = vmatprep.subr.bf16.mxu0 %v1253_v61 }
 0x136   : > { %1096 = vmatpush3.bf16.msra.mxu0 %v1254_v62 }
 0x137   : > { %1097 = vmatprep.subr.bf16.mxu0 %v1255_v63 }
 0x13a   : > { %1098 = vmatpush3.bf16.msra.mxu0 %v1256_v1 }
 0x13b   : > { %1099 = vmatprep.subr.bf16.mxu0 %v1257_v2 }
 0x13e   : > { %1100 = vmatpush3.bf16.msra.mxu0 %v1258_v3 }
 0x1f4   : > { %v606_v4 = vpop.f32.mrb[0].mxu0  ;;  %v647_v5 = vpop.f32.mrb[0].mxu1 }
 0x1f5   : > { %v1057_v6 = vclamps-f32 %v606_v4, 15.0  ;;  %v1061_v7 = vclamps-f32 %v647_v5, 15.0  ;;  %v608_v8 = vpop.f32.mrb[1].mxu0  ;;  %v649_v9 = vpop.f32.mrb[1].mxu1 }
 0x1f6   : > { %v1058_v10 = vclamps-f32 %v608_v8, 15.0  ;;  %v1062_v11 = vclamps-f32 %v649_v9, 15.0  ;;  %v610_v12 = vpop.f32.mrb[2].mxu0  ;;  %v651_v13 = vpop.f32.mrb[2].mxu1 }
 0x1f7   : > { %v1059_v14 = vmul.f32 -1.442695, %v1057_v6  ;;  %v1063_v15 = vmul.f32 -1.442695, %v1061_v7  ;;  %v611_v16 = vpop.f32.mrb[3].mxu0  ;;  %v652_v17 = vpop.f32.mrb[3].mxu1 }
 0x1f8   : > { %v1060_v18 = vmul.f32 -1.442695, %v1058_v10  ;;  %v1064_v19 = vmul.f32 -1.442695, %v1062_v11 }
 0x1f9   : > { %1261 = vpow2.f32 %v1059_v14 }
 0x1fa   : > { %1263 = vpow2.f32 %v1063_v15 }
 0x1fb   : > { %1265 = vpow2.f32 %v1060_v18 }
 0x1fc   : > { %1267 = vpow2.f32 %v1064_v19 }
 0x203   : > { %v1262_v20 = vpop.eup %1261 }
 0x204   : > { %v1264_v22 = vpop.eup %1263  ;;  %v664_v23 = vadd.f32 1.0, %v1262_v20 }
 0x205   : > { %v1266_v24 = vpop.eup %1265  ;;  %v696_v25 = vadd.f32 1.0, %v1264_v22 }
 0x206   : > { %v1268_v26 = vpop.eup %1267  ;;  %1269 = vrcp.f32 %v664_v23  ;;  %v665_v27 = vadd.f32 1.0, %v1266_v24 }
 0x207   : > { %1271 = vrcp.f32 %v696_v25  ;;  %v697_v29 = vadd.f32 1.0, %v1268_v26 }
 0x208   : > { %1273 = vrcp.f32 %v665_v27 }
 0x209   : > { %1275 = vrcp.f32 %v697_v29 }
 0x210   : > { %v1270_v34 = vpop.eup %1269 }
 0x211   : > { %v1272_v35 = vpop.eup %1271  ;;  %v670_v36 = vmul.f32 %v1270_v34, %v606_v4 }
 0x212   : > { %v1274_v38 = vpop.eup %1273  ;;  %v702_v41 = vmul.f32 %v1272_v35, %v1061_v7 }
 0x213   : > { %v1276_v39 = vpop.eup %1275  ;;  %v688_v40 = vmul.f32 %v681_v33, %v670_v36  ;;  %v671_v42 = vmul.f32 %v1274_v38, %v608_v8 }
 0x214   : > { %v703_v45 = vmul.f32 %v1276_v39, %v1062_v11 }
 0x215   : > { %v704_v43 = vmul.f32 %v702_v41, %v688_v40  ;;  %v689_v44 = vmul.f32 %v685_v37, %v671_v42 }
 0x217   : > { %v705_v46 = vmul.f32 %v703_v45, %v689_v44  ;;  %v707_v48 = vpack.c.bf16 %v704_v43, %v704_v43 }
 0x219   : > { %v708_v47 = vpack.c.bf16 %v705_v46, %v705_v46 }
 0x21b   : > { %869 = vmatprep.mubr.bf16.mxu0 %v708_v47 }
 0x21c   : > { %870 = vmatmul.mubr.bf16.vlgmr.msra.gmra.mrb[4].mxu0 %v707_v48 }
 0x2ef   : > { %v1101_v49 = vpop.f32.mrb[4].mxu0 }
 0x2f0   : > { %v1102_v50 = vpop.f32.mrb[5].mxu0 }
 0x2f1   : > { %v1103_v51 = vadd.f32 %v1102_v50, %v1101_v49  ;;  %v1104_v52 = vpop.f32.mrb[6].mxu0 }
 0x2f2   : > { %v1105_v53 = vpop.f32.mrb[7].mxu0 }
 0x2f3   : > { %v877_v54 = vadd.f32 %v1103_v51, %v1694_v0 }
 0x2f5   : > { %878 = vst [vmem:[%s336_s19] sm:$0xff] %v877_v54 }
 0x2f6   : > { %1376 = shalt.err (!%p1373_p11)
}
 0x2f7   : > { %s1377_s17 = scalar_lea.hbm %s1716_s28, 128  ;;  %s1381_s10 = scalar_lea.hbm %s1771_s6, 256 }
 0x2f8   : > { %p1378_p0 = scmp.ne.s32.totalorder %s1716_s28, %s1377_s17  ;;  %p1382_p6 = scmp.lt.u32.totalorder %s1716_s28, %s1771_s6 }
 0x2f9   : > { %p1383_p7 = scmp.lt.u32.totalorder %s1381_s10, %s1377_s17  ;;  %p1385_p8 = scmp.lt.u32.totalorder %s1377_s17, %s1716_s28 }
 0x2fa   : > { %p1379_p4 = pnand %p1378_p0, %p1788_p12 }
 0x2fb   : > { %p1384_p2 = por %p1383_p7, %p1382_p6 }
 0x2fc   : > { %p1380_p13 = pneg %p1379_p4 }
 0x2fd   : > { %p1386_p1 = por %p1385_p8, %p1384_p2 }
 0x2ff   : > { %p1387_p10 = pnand %p1386_p1, %p1380_p13 }
 0x301   : > { %1390 = shalt.err (!%p1387_p10)
}
 0x302   : > { %1117 = dma.vmem_to_hbm [thread:$0]  (%p1788_p12), %s1718_s30, 128, %s1716_s28, %s880_s24  }
 0x303 PF: > { %s1789_s19 = sld [smem:[#allocation13_spill]]  ;;  %s905_s12 = sand.u32 1, %s1429_s21  }
 0x304   : > { %p1791_p5 = scmp.ge.s32.totalorder %s1449_s26, 2  ;;  %s906_s14 = scalar_lea.sflag [#allocation5], %s905_s12 }
 0x309   : > { %p1790_p3 = scmp.ne.s32.totalorder %s1789_s19, 0 }
 0x30b   : > { %p1131_p9 = pnand %p1791_p5, %p1790_p3 }
 0x30d   : > { %1424 = dma.done.wait (!%p1131_p9), %s906_s14, 128  }
 0x30e   : > { %1426 = vsyncadd (!%p1131_p9), %s906_s14, 4294967168  ;;  %s23_s26 = sadd.s32 1, %s1449_s26   ;;  %s1792_s21 = smov %s1433_s22 }
 0x30f   : > { %p20_p11 = scmp.ge.s32.totalorder %s23_s26, 4   ;;  %s1793_s22 = smov %s1437_s23 }
 0x310   : > { %s1794_s23 = smov %s1637_s27  ;;  %s1795_s24 = smov %s1445_s25 }
 0x311   : > { %s1796_s25 = smov %s1798_s16  ;;  %22 = sbr.rel (!%p20_p11) target bundleno = 7 (0x7), region = 106 }
 0x318   :  { %911 = vsyncpa [#allocation4], 1 }
 0x319   :  { %913 = vsyncpa [#allocation4 + $0x1], 1 }
 0x31a   :  { %914 = vsyncpa [#allocation7], 1 }
 0x31b   :  { %915 = vsyncpa [#allocation5], 1 }
 0x31c   :  { %917 = vsyncpa [#allocation5 + $0x1], 1 }

</bundles_post_ra>
